<compile_context>
chip_gen: v5e
topology: v5e:2x2
jax: 0.10.0
libtpu: 0.0.40
codegen_flags: <defaults>
</compile_context>

<pallas_src>
import jax
import jax.numpy as jnp
from jax.experimental import pallas as pl
from jax.experimental.pallas import tpu as pltpu


def _round_up(a, b):
    return (a + b - 1) // b * b


def _blinear_kernel(bias_ref, x_ref, y_ref, w_ref, o_ref):
    # bias_ref: SMEM (1,); x_ref/y_ref: (TM, n_h); w_ref: (n_h, n_h); o_ref: (TM, 1)
    # MXU matmul in W's dtype (bf16 for large n_h, f32 for tiny n_h), f32 accumulation.
    x = x_ref[...].astype(w_ref.dtype)
    t = jnp.dot(x, w_ref[...], preferred_element_type=jnp.float32)      # (TM, n_h) f32
    # VPU row-wise multiply in f32 + XLU last-axis reduction -> per-row bilinear form.
    z = jnp.sum(t * y_ref[...].astype(jnp.float32), axis=-1, keepdims=True)
    o_ref[...] = (z + bias_ref[0]).astype(o_ref.dtype)


def _choose_tm(N, n_h, in_itemsize):
    # Target ~4 MiB per x/y tile: >=85% of HBM roofline, per-step overhead hidden.
    budget = 4 << 20
    tm = budget // max(1, n_h * in_itemsize)
    tm = max(128, min(tm, 2048))
    # Give v7x's two TensorCores at least 2 grid steps to split (no-op on v5e/v6e).
    if N >= 64:
        tm = min(tm, _round_up(-(-N // 2), 16))
    # Never much bigger than the batch itself.
    tm = min(tm, _round_up(N, 8))
    # bf16 LHS packs 16 rows per sublane group -> prefer multiples of 16.
    return _round_up(tm, 16) if tm >= 16 else _round_up(tm, 8)


def blinear_forward(x, y, w, bias):
    """x, y: (N, n_h); w: (n_h, n_h); bias: (1,). Returns (N, 1) == nn.Bilinear(n_h, n_h, 1)(x, y)."""
    N, n_h = x.shape
    assert y.shape == (N, n_h) and w.shape == (n_h, n_h) and bias.shape == (1,)
    out_dtype = x.dtype

    # Cast W to the MXU dtype ONCE here (n_h^2 bytes, one pass) instead of every
    # grid step inside the kernel. Tiny n_h stays f32 (accuracy, no relayout win).
    use_bf16_mxu = (n_h >= 128) and (w.dtype == jnp.float32)
    w_mxu = w.astype(jnp.bfloat16) if use_bf16_mxu else w

    in_itemsize = max(jnp.dtype(x.dtype).itemsize, jnp.dtype(y.dtype).itemsize)
    TM = _choose_tm(N, n_h, in_itemsize)
    num_tiles = -(-N // TM)  # partial trailing block; no jnp.pad HBM copy needed.

    # Advisory scheduling hint: actual per-operand itemsizes, unpadded N.
    cost = pl.CostEstimate(
        flops=2 * N * n_h * n_h + 2 * N * n_h,
        transcendentals=0,
        bytes_accessed=(
            N * n_h * jnp.dtype(x.dtype).itemsize
            + N * n_h * jnp.dtype(y.dtype).itemsize
            + n_h * n_h * jnp.dtype(w_mxu.dtype).itemsize
            + N * jnp.dtype(out_dtype).itemsize
            + jnp.dtype(bias.dtype).itemsize
        ),
    )

    # Explicit VMEM budget: double-buffered x/y tiles + (double-buffered) W +
    # the (TM, n_h) f32 matmul intermediate, with 2x headroom; clamp to the
    # smallest physical VMEM across generations (v7x: 64 MiB per TC).
    vmem_need = (
        2 * TM * n_h * (jnp.dtype(x.dtype).itemsize + jnp.dtype(y.dtype).itemsize)
        + 2 * n_h * n_h * jnp.dtype(w_mxu.dtype).itemsize
        + TM * n_h * 4
    )
    vmem_limit = int(min(max(2 * vmem_need, 16 << 20), 64 << 20))

    out = pl.pallas_call(
        _blinear_kernel,
        out_shape=jax.ShapeDtypeStruct((N, 1), out_dtype),
        grid_spec=pltpu.PrefetchScalarGridSpec(
            num_scalar_prefetch=0,
            grid=(num_tiles,),
            in_specs=[
                pl.BlockSpec(memory_space=pltpu.SMEM),          # bias scalar
                pl.BlockSpec((TM, n_h), lambda i: (i, 0)),      # x batch tile
                pl.BlockSpec((TM, n_h), lambda i: (i, 0)),      # y batch tile
                pl.BlockSpec((n_h, n_h), lambda i: (0, 0)),     # W (VMEM-resident)
            ],
            out_specs=pl.BlockSpec((TM, 1), lambda i: (i, 0)),
        ),
        compiler_params=pltpu.CompilerParams(
            dimension_semantics=("parallel",),                  # megacore on v7x
            vmem_limit_bytes=vmem_limit,
        ),
        cost_estimate=cost,
    )(bias, x, y, w_mxu)

    return out


def _reference(x, y, w, bias):
    # Pure-JAX f32 reference of torch.nn.Bilinear(n_h, n_h, 1) forward.
    return jnp.einsum("bi,ij,bj->b", x, w, y)[:, None] + bias[0]


if __name__ == "__main__":
    key = jax.random.PRNGKey(0)
    keys = jax.random.split(key, 8)

    def make_case(kx, ky, kw, kb, N, n_h):
        bound = 1.0 / jnp.sqrt(jnp.float32(n_h))
        w = jax.random.uniform(kw, (n_h, n_h), jnp.float32, -bound, bound)
        bias = jax.random.uniform(kb, (1,), jnp.float32, -bound, bound)
        x = jax.random.normal(kx, (N, n_h), jnp.float32)
        y = jax.random.normal(ky, (N, n_h), jnp.float32)
        return x, y, w, bias

    def check(z, z_ref, tol):
        err = float(jnp.max(jnp.abs(z - z_ref)))
        scale = float(jnp.max(jnp.abs(z_ref)))
        assert err <= tol * max(1.0, scale), (err, scale)

    # Case 1: the module's nominal small shapes (single grid step, pure f32 path).
    n_h, N = 32, 8
    x, y, w, bias = make_case(keys[0], keys[1], keys[2], keys[3], N, n_h)
    z = blinear_forward(x, y, w, bias)
    jax.block_until_ready(z)
    assert z.shape == (N, 1)
    check(z, _reference(x, y, w, bias), 5e-2)

    # Case 2: multi-step pipeline + partial trailing block + bf16-W MXU path.
    n_h2, N2 = 128, 300
    x2, y2, w2, bias2 = make_case(keys[4], keys[5], keys[6], keys[7], N2, n_h2)
    z2 = blinear_forward(x2, y2, w2, bias2)
    jax.block_until_ready(z2)
    assert z2.shape == (N2, 1)
    check(z2, _reference(x2, y2, w2, bias2), 5e-2)

    print("KERNEL_OK")
</pallas_src>

<mosaic_0001>
module attributes {stable_mosaic.version = 11 : i64} {
  func.func @_blinear_kernel(%arg0: i32, %arg1: memref<1xf32, #tpu.memory_space<smem>>, %arg2: memref<8x32xf32, #tpu.memory_space<vmem>>, %arg3: memref<8x32xf32, #tpu.memory_space<vmem>>, %arg4: memref<32x32xf32, #tpu.memory_space<vmem>>, %arg5: memref<8x1xf32, #tpu.memory_space<vmem>>) attributes {dimension_semantics = [#tpu.dimension_semantics<parallel>], iteration_bounds = array<i64: 1>, scalar_prefetch = 0 : i64, scratch_operands = 0 : i64, tpu.core_type = #tpu.core_type<tc>, window_params = [{transform_indices = @transform_0, window_bounds = array<i64: 1>}, {transform_indices = @transform_1, window_bounds = array<i64: 8, 32>}, {transform_indices = @transform_2, window_bounds = array<i64: 8, 32>}, {pipeline_mode = #tpu.pipeline_mode<synchronous>, transform_indices = @transform_3, window_bounds = array<i64: 32, 32>}, {transform_indices = @transform_4, window_bounds = array<i64: 8, 1>}]} {
    %c0 = arith.constant 0 : index
    %c0_0 = arith.constant 0 : index
    %0 = vector.load %arg2[%c0, %c0_0] : memref<8x32xf32, #tpu.memory_space<vmem>>, vector<8x32xf32>
    %c0_1 = arith.constant 0 : index
    %c0_2 = arith.constant 0 : index
    %1 = vector.load %arg4[%c0_1, %c0_2] : memref<32x32xf32, #tpu.memory_space<vmem>>, vector<32x32xf32>
    %cst = arith.constant dense<0.000000e+00> : vector<8x32xf32>
    %2 = tpu.matmul %0, %1, %cst {dimension_numbers = #tpu.dot_dimension_numbers<[1], [0], [0], [1], [0, 0, 1, 1], [], []>} : vector<8x32xf32>, vector<32x32xf32>, vector<8x32xf32> -> vector<8x32xf32>
    %c0_3 = arith.constant 0 : index
    %c0_4 = arith.constant 0 : index
    %3 = vector.load %arg3[%c0_3, %c0_4] : memref<8x32xf32, #tpu.memory_space<vmem>>, vector<8x32xf32>
    %4 = arith.mulf %2, %3 : vector<8x32xf32>
    %cst_5 = arith.constant dense<0.000000e+00> : vector<8xf32>
    %5 = vector.multi_reduction <add>, %4, %cst_5 [1] : vector<8x32xf32> to vector<8xf32>
    %6 = vector.shape_cast %5 : vector<8xf32> to vector<8x1xf32>
    %c0_6 = arith.constant 0 : index
    %7 = memref.load %arg1[%c0_6] : memref<1xf32, #tpu.memory_space<smem>>
    %8 = vector.broadcast %7 : f32 to vector<8x1xf32>
    %9 = arith.addf %6, %8 : vector<8x1xf32>
    %c0_7 = arith.constant 0 : index
    %c0_8 = arith.constant 0 : index
    %10 = vector.load %arg5[%c0_7, %c0_8] : memref<8x1xf32, #tpu.memory_space<vmem>>, vector<8x1xf32>
    tpu.vector_store %arg5[%c0_7, %c0_8], %9 {strides = array<i32>} : memref<8x1xf32, #tpu.memory_space<vmem>>, vector<8x1xf32>,
    return
  }
  func.func @transform_0(%arg0: i32) -> i32 {
    %c0_i32 = arith.constant 0 : i32
    %c0_i32_0 = arith.constant 0 : i32
    return %c0_i32 : i32
  }
  func.func @transform_1(%arg0: i32) -> (i32, i32) {
    %c0_i32 = arith.constant 0 : i32
    %c0_i32_0 = arith.constant 0 : i32
    return %arg0, %c0_i32 : i32, i32
  }
  func.func @transform_2(%arg0: i32) -> (i32, i32) {
    %c0_i32 = arith.constant 0 : i32
    %c0_i32_0 = arith.constant 0 : i32
    return %arg0, %c0_i32 : i32, i32
  }
  func.func @transform_3(%arg0: i32) -> (i32, i32) {
    %c0_i32 = arith.constant 0 : i32
    %c0_i32_0 = arith.constant 0 : i32
    %c0_i32_1 = arith.constant 0 : i32
    return %c0_i32, %c0_i32_0 : i32, i32
  }
  func.func @transform_4(%arg0: i32) -> (i32, i32) {
    %c0_i32 = arith.constant 0 : i32
    %c0_i32_0 = arith.constant 0 : i32
    return %arg0, %c0_i32 : i32, i32
  }
}

</mosaic_0001>

<bundles_post_ra>
// kernel: tpu_custom_call.1
= control target key start
LH: loop header
LB: loop body
LE: loop exit
PB: predicated region body
PF: predicated region fallthrough
CT: control target
= control target key end

     0   :  { %10 = vsyncpa [#allocation4], 0  ;;  %s233_s0 = inlined_call_operand.<no memory space> [shape: f32[1], index: 0, kind: input, shape index: {}]   ;;  %s234_s1 = inlined_call_operand.hbm [shape: f32[8,32], index: 1, kind: input, shape index: {}]   ;;  %s235_s2 = inlined_call_operand.hbm [shape: f32[8,32], index: 2, kind: input, shape index: {}]   ;;  %s236_s3 = inlined_call_operand.hbm [shape: f32[32,32], index: 3, kind: input, shape index: {}]   ;;  %s237_s4 = inlined_call_operand.vmem [shape: f32[8,1], index: 4, kind: output, shape index: {}]  }
   0x1   :  { %11 = vsyncpa [#allocation6], 0  ;;  %s30_s17 = sshll.u32 %s235_s2, 4  ;;  %s188_s18 = smov [#allocation5]   ;;  %s31_s17 = int_to_ptr.hbm [resolvable:$true] %s30_s17 }
   0x2   :  { %s32_s19 = sshll.u32 %s188_s18, 4  ;;  %s19_s22 = sshll.u32 %s234_s1, 4  ;;  %s33_s19 = int_to_ptr.vmem [resolvable:$true] %s32_s19  ;;  %s20_s22 = int_to_ptr.hbm [resolvable:$true] %s19_s22 }
   0x3   :  { %35 = dma.hbm_to_vmem [thread:$0]  %s31_s17, 128, %s33_s19, [#allocation6]  }
   0x4   :  { %s189_s23 = smov [#allocation3]   ;;  %s40_s27 = sshll.u32 %s236_s3, 4  ;;  %s41_s27 = int_to_ptr.hbm [resolvable:$true] %s40_s27 }
   0x5   :  { %s21_s24 = sshll.u32 %s189_s23, 4  ;;  %s190_s2 = smov [#allocation7]   ;;  %s22_s24 = int_to_ptr.vmem [resolvable:$true] %s21_s24 }
   0x6   :  { %24 = dma.hbm_to_vmem [thread:$0]  %s20_s22, 128, %s22_s24, [#allocation4]  }
   0x7   :  { %s42_s28 = sshll.u32 %s190_s2, 4  ;;  %s191_s29 = smov 128   ;;  %s43_s28 = int_to_ptr.vmem [resolvable:$true] %s42_s28 }
   0x8   :  { %s192_s30 = smov 8  }
   0x9   :  { %48 = dma.hbm_to_vmem [thread:$0]  %s41_s27, 512, %s43_s28, [#allocation6], %s191_s29, %s191_s29, %s192_s30  }
   0xa   :  { %184 = dma.done.wait [#allocation4], 128  }
   0xb   :  { %185 = vsyncadd [#allocation4], 4294967168 }
   0xc   :  { %186 = dma.done.wait [#allocation6], 640  }
   0xd   :  { %187 = vsyncadd [#allocation6], 4294966656  ;;  %v65_v0 = vld [vmem:[#allocation7 + $0x18] sm:$0xff]  ;;  %v64_v1 = vld [vmem:[#allocation7 + $0x10] sm:$0xff]  ;;  %vm66_vm0 = vcmask 261120   ;;  %v96_v9 = vstv %s233_s0  ;;  %vm98_vm1 = vcmask 7168  }
   0xe   :  { %82 = vmatpush.msra.mxu0 %v65_v0  ;;  %v63_v2 = vld [vmem:[#allocation7 + $0x8] sm:$0xff]  ;;  %v62_v3 = vld [vmem:[#allocation7] sm:$0xff]  ;;  %v61_v4 = vld [vmem:[#allocation3] sm:$0xff] }
   0xf   :  { %v90_v5 = vld [vmem:[#allocation5] sm:$0xff] }
  0x10   :  { %83 = vmatpush.msra.mxu0 %v64_v1 }
  0x12   :  { %84 = vmatpush.msra.mxu0 %v63_v2 }
  0x14   :  { %85 = vmatpush.msra.mxu0 %v62_v3 }
  0x15   :  { %106 = vmatmul.msk.f32.vlgmr.msra.gmra.mxu0 %vm66_vm0, %v61_v4 }
  0x92   :  { %v87_v6 = vpop.f32.mrf.mxu0 }
  0x93   :  { %v91_v7 = vmul.f32 %v90_v5, %v87_v6 }
  0x95   :  { %v92_v8 = vsel %vm66_vm0, %v91_v7, 0.0 }
  0x96   :  { %93 = vadd.xlane.f32.xlu0 %v92_v8 }
 0x109   :  { %v94_v10 = vpop.xlane.xlu0 %93 }
 0x10a   :  { %v97_v11 = vadd.f32 %v96_v9, %v94_v10 }
 0x10c   :  { %99 = vst.msk [vmem:[%s237_s4] sm:$0xff] %vm98_vm1, %v97_v11 }
 0x10d   :  { %104 = vsyncpa [#allocation4], 1 }
 0x10e   :  { %105 = vsyncpa [#allocation6], 1 }

</bundles_post_ra>
